<compile_context>
chip_gen: v6e
topology: v6e:2x2x1
jax: 0.10.0
libtpu: 0.0.40
codegen_flags: <defaults>
</compile_context>

<pallas_src>
import jax
import jax.numpy as jnp
from jax.experimental import pallas as pl
from jax.experimental.pallas import tpu as pltpu

LN_EPS = 1e-5  # nn.LayerNorm default


def _round_up(x, m):
    return (x + m - 1) // m * m


def _vmem_capacity_bytes():
    """Per-core VMEM capacity; conservative fallback if the query fails."""
    try:
        cap = int(pltpu.get_tpu_info().vmem_capacity_bytes)
        if cap > 0:
            return cap
    except Exception:
        pass
    return 64 << 20  # v7x per-TC VMEM (smallest current part)


def _pm_ln_linear_kernel(x_ref, wa_ref, wb_ref, bias_ref, o_ref):
    """Fused LayerNorm(4C) + Linear(4C -> out) on one row tile.

    x_ref:   (tr, 2, W2, 2C) both h-parity halves of the 2x2 patches, delivered
                             as ONE contiguous block per grid step.  Feature
                             order inside the last dim: (w-parity, channel).
    wa_ref:  (2C, out)       weight rows matching the h-parity-0 feature order,
                             LayerNorm gamma already folded in.
    wb_ref:  (2C, out)       weight rows matching the h-parity-1 feature order.
    bias_ref:(1, out)        beta @ W (LayerNorm beta folded through the linear).
    o_ref:   (tr, W2, out)
    """
    tr, _, w2, c2 = x_ref.shape
    inv_4c = 1.0 / (2 * c2)

    h0 = x_ref[:, 0].astype(jnp.float32)   # (tr, W2, 2C)  h-parity 0
    h1 = x_ref[:, 1].astype(jnp.float32)   # (tr, W2, 2C)  h-parity 1

    # Single-pass LN stats over both halves (no d0/d1 temporaries).
    s = jnp.sum(h0, axis=-1, keepdims=True) + jnp.sum(h1, axis=-1, keepdims=True)
    ss = (jnp.sum(h0 * h0, axis=-1, keepdims=True)
          + jnp.sum(h1 * h1, axis=-1, keepdims=True))
    mean = s * inv_4c
    var = jnp.maximum(ss * inv_4c - mean * mean, 0.0)
    inv = jax.lax.rsqrt(var + LN_EPS)

    wdt = wa_ref.dtype          # weights are pre-cast to the compute dtype
    m = tr * w2
    # Normalize fused into the compute-dtype cast.  NOTE: when W2 % 8 != 0 the
    # reshape implies a sublane repack; for such stages a W2-preserving
    # contraction (or a one-row sublane pad of W2) would avoid it.
    n0 = ((h0 - mean) * inv).reshape(m, c2).astype(wdt)
    n1 = ((h1 - mean) * inv).reshape(m, c2).astype(wdt)

    acc = jnp.dot(n0, wa_ref[...], preferred_element_type=jnp.float32)
    acc = acc + jnp.dot(n1, wb_ref[...], preferred_element_type=jnp.float32)
    acc = acc + bias_ref[...]
    o_ref[...] = acc.reshape(tr, w2, -1).astype(o_ref.dtype)


def _select_row_tile(R, W2, C2, out_dim, in_itemsize, out_itemsize, w_itemsize,
                     tile_rows, vmem_budget_bytes):
    """Pick tr = number of (b, h2) rows per grid step under a VMEM budget.

    Counts double-buffered pipeline blocks AND the kernel-internal temporaries
    so the chosen tile actually fits the requested vmem_limit_bytes.
    """
    sub_w2 = _round_up(max(W2, 1), 8)
    lane_in = _round_up(C2, 128)
    lane_out = _round_up(out_dim, 128)

    # Double-buffered pipeline blocks per row: (2, W2, 2C) in + (W2, out) out.
    dbuf = (2 * (2 * sub_w2 * lane_in * in_itemsize)
            + 2 * (sub_w2 * lane_out * out_itemsize))
    # Kernel temporaries per row: f32 h0/h1, compute-dtype n0/n1, f32 acc.
    temps = 2 * sub_w2 * lane_in * (4 + w_itemsize) + sub_w2 * lane_out * 4
    per_r = dbuf + temps

    # Resident weights (x2: default double-buffering of the constant-index
    # blocks; pl.Buffered(1) could reclaim the spare copy on very-large-C
    # stages) + bias.
    weight_bytes = 2 * (2 * _round_up(C2, 8) * lane_out * w_itemsize
                        + 8 * lane_out * 4)

    avail = max(vmem_budget_bytes - weight_bytes, per_r)
    tr = int(min(R, max(1, avail // per_r)))
    if tile_rows is not None:
        tr = min(tr, max(1, tile_rows // max(W2, 1)))

    if R >= 2:
        # >= 2 grid steps so the single "parallel" axis can shard across both
        # TensorCores (v7x) / megacore, and prefer an EVEN step count so both
        # cores get balanced work even with a ragged last block.
        tr = min(tr, pl.cdiv(R, 2))
        steps = pl.cdiv(R, tr)
        if steps % 2 == 1:
            tr_even = pl.cdiv(R, steps + 1)
            if pl.cdiv(R, tr_even) % 2 == 0:
                tr = tr_even
    tr = max(int(tr), 1)
    est_bytes = weight_bytes + tr * per_r
    return tr, est_bytes


def patch_merging_2d(x, gamma, beta, w_t, *, tile_rows=None, matmul_dtype=None,
                     vmem_budget_bytes=None):
    """PatchMerging2D forward.

    x:     (B, H, W, C) channels-last, as in the PyTorch module.
    gamma: (4C,), beta: (4C,) LayerNorm(4C) affine params (torch concat order).
    w_t:   (4C, out_dim) transposed weight of nn.Linear(4C, out, bias=False),
           rows in torch concat order [x0 | x1 | x2 | x3].
    Returns (B, ceil(H/2), ceil(W/2), out_dim) in x.dtype.
    """
    B, H, W, C = x.shape
    C4, out_dim = w_t.shape
    assert C4 == 4 * C, (C4, C)

    if (H % 2) or (W % 2):
        x = jnp.pad(x, ((0, 0), (0, H % 2), (0, W % 2), (0, 0)))
    H2, W2 = (H + 1) // 2, (W + 1) // 2
    R = B * H2
    C2 = 2 * C

    # Free (metadata-only) reshape: (B, H, W, C) -> (B*H2, h-parity, W2, 2C).
    # Inside the last dim the layout is (w-parity, channel).
    x5 = x.reshape(R, 2, W2, C2)

    # Compute dtype: bf16 MXU path by default for bf16 activations (native on
    # v6e/v7x, halves weight/n0/n1 VMEM); f32 otherwise so numerics stay tight.
    if matmul_dtype is None:
        compute_dtype = (jnp.dtype(jnp.bfloat16) if x.dtype == jnp.bfloat16
                         else jnp.dtype(jnp.float32))
    else:
        compute_dtype = jnp.dtype(matmul_dtype)

    # Fold the LN affine into the linear, then split/permute the weight rows to
    # the kernel's feature order: h-parity 0 half -> torch blocks [x0, x2],
    # h-parity 1 half -> torch blocks [x1, x3].
    w_eff = gamma.astype(jnp.float32)[:, None] * w_t.astype(jnp.float32)
    bias_eff = (beta.astype(jnp.float32) @ w_t.astype(jnp.float32)).reshape(1, out_dim)
    w_a = jnp.concatenate([w_eff[0:C], w_eff[2 * C:3 * C]], axis=0).astype(compute_dtype)
    w_b = jnp.concatenate([w_eff[C:2 * C], w_eff[3 * C:4 * C]], axis=0).astype(compute_dtype)

    # Generation-aware VMEM budget: big tiles on 128 MiB parts (v5e/v6e),
    # tight on v7x's 64 MiB per-TC VMEM.
    vmem_cap = _vmem_capacity_bytes()
    if vmem_budget_bytes is None:
        vmem_budget_bytes = int(vmem_cap * 0.55)

    tr, est_bytes = _select_row_tile(
        R, W2, C2, out_dim,
        in_itemsize=x.dtype.itemsize, out_itemsize=x.dtype.itemsize,
        w_itemsize=compute_dtype.itemsize,
        tile_rows=tile_rows, vmem_budget_bytes=vmem_budget_bytes)
    grid = (pl.cdiv(R, tr),)
    vmem_limit = int(min(vmem_cap, max(32 << 20, int(1.3 * est_bytes) + (4 << 20))))

    # Output lanes are intentionally NOT padded to 128: padding + a wrapper-side
    # slice would cost a full extra HBM pass, which exceeds the masked-store
    # penalty for this memory-bound op (revisit only for out_dim << 128 stages).
    out = pl.pallas_call(
        _pm_ln_linear_kernel,
        out_shape=jax.ShapeDtypeStruct((R, W2, out_dim), x.dtype),
        grid_spec=pltpu.PrefetchScalarGridSpec(
            num_scalar_prefetch=0,
            grid=grid,
            in_specs=[
                # Single contiguous block per step carrying BOTH h-parity
                # halves (one DMA instead of two strided ones).
                pl.BlockSpec((tr, 2, W2, C2), lambda i: (i, 0, 0, 0)),
                pl.BlockSpec((C2, out_dim), lambda i: (0, 0)),   # resident weight A
                pl.BlockSpec((C2, out_dim), lambda i: (0, 0)),   # resident weight B
                pl.BlockSpec((1, out_dim), lambda i: (0, 0)),    # folded bias
            ],
            out_specs=pl.BlockSpec((tr, W2, out_dim), lambda i: (i, 0, 0)),
        ),
        compiler_params=pltpu.CompilerParams(
            dimension_semantics=("parallel",),
            vmem_limit_bytes=vmem_limit,
        ),
    )(x5, w_a, w_b, bias_eff)

    return out.reshape(B, H2, W2, out_dim)


# ----------------------------- pure-JAX reference -----------------------------

def _patch_merging_pad_ref(x):
    B, H, W, C = x.shape
    if (H % 2) or (W % 2):
        x = jnp.pad(x, ((0, 0), (0, H % 2), (0, W % 2), (0, 0)))
    x0 = x[:, 0::2, 0::2, :]
    x1 = x[:, 1::2, 0::2, :]
    x2 = x[:, 0::2, 1::2, :]
    x3 = x[:, 1::2, 1::2, :]
    return jnp.concatenate([x0, x1, x2, x3], axis=-1)


def patch_merging_2d_ref(x, gamma, beta, w_t):
    xm = _patch_merging_pad_ref(x).astype(jnp.float32)
    mean = jnp.mean(xm, axis=-1, keepdims=True)
    var = jnp.mean((xm - mean) ** 2, axis=-1, keepdims=True)
    xn = (xm - mean) * jax.lax.rsqrt(var + LN_EPS)
    xn = xn * gamma.astype(jnp.float32) + beta.astype(jnp.float32)
    return jnp.einsum("bhwc,cd->bhwd", xn, w_t.astype(jnp.float32)).astype(x.dtype)


if __name__ == "__main__":
    key = jax.random.PRNGKey(0)
    k_x, k_g, k_b, k_w, k_x2 = jax.random.split(key, 5)

    # Case 1: canonical small shape — batch=2, H=W=16, dim=4 (4C=16, out=8).
    B, H, W, dim = 2, 16, 16, 4
    out_dim = 2 * dim
    x = jax.random.normal(k_x, (B, H, W, dim), dtype=jnp.float32)
    gamma = 1.0 + 0.1 * jax.random.normal(k_g, (4 * dim,), dtype=jnp.float32)
    beta = 0.1 * jax.random.normal(k_b, (4 * dim,), dtype=jnp.float32)
    # torch Linear stores weight as (out, in); the wrapper consumes (in, out).
    w = jax.random.normal(k_w, (out_dim, 4 * dim), dtype=jnp.float32) / jnp.sqrt(4.0 * dim)
    w_t = w.T

    out = jax.block_until_ready(patch_merging_2d(x, gamma, beta, w_t))
    ref = patch_merging_2d_ref(x, gamma, beta, w_t)
    assert out.shape == (B, H // 2, W // 2, out_dim), out.shape
    assert jnp.allclose(out, ref, atol=1e-4, rtol=1e-4), float(jnp.max(jnp.abs(out - ref)))

    # Case 2: odd H (pad path) and a row count that does not divide the tile
    # (ragged last grid block).
    B2, Hb, Wb = 1, 9, 16
    x2 = jax.random.normal(k_x2, (B2, Hb, Wb, dim), dtype=jnp.float32)
    out2 = jax.block_until_ready(patch_merging_2d(x2, gamma, beta, w_t))
    ref2 = patch_merging_2d_ref(x2, gamma, beta, w_t)
    assert out2.shape == (B2, (Hb + 1) // 2, Wb // 2, out_dim), out2.shape
    assert jnp.allclose(out2, ref2, atol=1e-4, rtol=1e-4), float(jnp.max(jnp.abs(out2 - ref2)))

    # Case 3: bf16 activations -> default bf16 MXU path (looser tolerance).
    xb = x.astype(jnp.bfloat16)
    out3 = jax.block_until_ready(patch_merging_2d(xb, gamma, beta, w_t))
    ref3 = patch_merging_2d_ref(xb, gamma, beta, w_t)
    assert out3.dtype == jnp.bfloat16, out3.dtype
    d3 = jnp.max(jnp.abs(out3.astype(jnp.float32) - ref3.astype(jnp.float32)))
    assert jnp.allclose(out3.astype(jnp.float32), ref3.astype(jnp.float32),
                        atol=6e-2, rtol=6e-2), float(d3)

    print("KERNEL_OK")
</pallas_src>

<mosaic_0001>
module attributes {stable_mosaic.version = 11 : i64} {
  func.func @_pm_ln_linear_kernel(%arg0: i32, %arg1: memref<8x2x8x8xf32, #tpu.memory_space<vmem>>, %arg2: memref<8x8xf32, #tpu.memory_space<vmem>>, %arg3: memref<8x8xf32, #tpu.memory_space<vmem>>, %arg4: memref<1x8xf32, #tpu.memory_space<vmem>>, %arg5: memref<8x8x8xf32, #tpu.memory_space<vmem>>) attributes {dimension_semantics = [#tpu.dimension_semantics<parallel>], iteration_bounds = array<i64: 2>, scalar_prefetch = 0 : i64, scratch_operands = 0 : i64, tpu.core_type = #tpu.core_type<tc>, window_params = [{transform_indices = @transform_0, window_bounds = array<i64: 8, 2, 8, 8>}, {pipeline_mode = #tpu.pipeline_mode<synchronous>, transform_indices = @transform_1, window_bounds = array<i64: 8, 8>}, {pipeline_mode = #tpu.pipeline_mode<synchronous>, transform_indices = @transform_2, window_bounds = array<i64: 8, 8>}, {pipeline_mode = #tpu.pipeline_mode<synchronous>, transform_indices = @transform_3, window_bounds = array<i64: 1, 8>}, {transform_indices = @transform_4, window_bounds = array<i64: 8, 8, 8>}]} {
    %c0 = arith.constant 0 : index
    %c0_0 = arith.constant 0 : index
    %c0_1 = arith.constant 0 : index
    %c0_2 = arith.constant 0 : index
    %0 = vector.load %arg1[%c0, %c0_0, %c0_1, %c0_2] : memref<8x2x8x8xf32, #tpu.memory_space<vmem>>, vector<8x1x8x8xf32>
    %1 = vector.shape_cast %0 : vector<8x1x8x8xf32> to vector<8x8x8xf32>
    %c0_3 = arith.constant 0 : index
    %c1 = arith.constant 1 : index
    %c0_4 = arith.constant 0 : index
    %c0_5 = arith.constant 0 : index
    %2 = vector.load %arg1[%c0_3, %c1, %c0_4, %c0_5] : memref<8x2x8x8xf32, #tpu.memory_space<vmem>>, vector<8x1x8x8xf32>
    %3 = vector.shape_cast %2 : vector<8x1x8x8xf32> to vector<8x8x8xf32>
    %cst = arith.constant dense<0.000000e+00> : vector<8x8xf32>
    %4 = vector.multi_reduction <add>, %1, %cst [2] : vector<8x8x8xf32> to vector<8x8xf32>
    %5 = vector.shape_cast %4 : vector<8x8xf32> to vector<8x8x1xf32>
    %cst_6 = arith.constant dense<0.000000e+00> : vector<8x8xf32>
    %6 = vector.multi_reduction <add>, %3, %cst_6 [2] : vector<8x8x8xf32> to vector<8x8xf32>
    %7 = vector.shape_cast %6 : vector<8x8xf32> to vector<8x8x1xf32>
    %8 = arith.addf %5, %7 : vector<8x8x1xf32>
    %9 = arith.mulf %1, %1 : vector<8x8x8xf32>
    %cst_7 = arith.constant dense<0.000000e+00> : vector<8x8xf32>
    %10 = vector.multi_reduction <add>, %9, %cst_7 [2] : vector<8x8x8xf32> to vector<8x8xf32>
    %11 = vector.shape_cast %10 : vector<8x8xf32> to vector<8x8x1xf32>
    %12 = arith.mulf %3, %3 : vector<8x8x8xf32>
    %cst_8 = arith.constant dense<0.000000e+00> : vector<8x8xf32>
    %13 = vector.multi_reduction <add>, %12, %cst_8 [2] : vector<8x8x8xf32> to vector<8x8xf32>
    %14 = vector.shape_cast %13 : vector<8x8xf32> to vector<8x8x1xf32>
    %15 = arith.addf %11, %14 : vector<8x8x1xf32>
    %cst_9 = arith.constant 6.250000e-02 : f32
    %16 = vector.broadcast %cst_9 : f32 to vector<8x8x1xf32>
    %17 = arith.mulf %8, %16 : vector<8x8x1xf32>
    %cst_10 = arith.constant 6.250000e-02 : f32
    %18 = vector.broadcast %cst_10 : f32 to vector<8x8x1xf32>
    %19 = arith.mulf %15, %18 : vector<8x8x1xf32>
    %20 = arith.mulf %17, %17 : vector<8x8x1xf32>
    %21 = arith.subf %19, %20 : vector<8x8x1xf32>
    %cst_11 = arith.constant 0.000000e+00 : f32
    %22 = vector.broadcast %cst_11 : f32 to vector<8x8x1xf32>
    %23 = arith.maximumf %21, %22 : vector<8x8x1xf32>
    %cst_12 = arith.constant 9.99999974E-6 : f32
    %24 = vector.broadcast %cst_12 : f32 to vector<8x8x1xf32>
    %25 = arith.addf %23, %24 : vector<8x8x1xf32>
    %26 = math.rsqrt %25 : vector<8x8x1xf32>
    %27 = vector.broadcast %17 : vector<8x8x1xf32> to vector<8x8x8xf32>
    %28 = arith.subf %1, %27 : vector<8x8x8xf32>
    %29 = vector.broadcast %26 : vector<8x8x1xf32> to vector<8x8x8xf32>
    %30 = arith.mulf %28, %29 : vector<8x8x8xf32>
    %31 = vector.shape_cast %30 : vector<8x8x8xf32> to vector<64x8xf32>
    %32 = vector.broadcast %17 : vector<8x8x1xf32> to vector<8x8x8xf32>
    %33 = arith.subf %3, %32 : vector<8x8x8xf32>
    %34 = vector.broadcast %26 : vector<8x8x1xf32> to vector<8x8x8xf32>
    %35 = arith.mulf %33, %34 : vector<8x8x8xf32>
    %36 = vector.shape_cast %35 : vector<8x8x8xf32> to vector<64x8xf32>
    %c0_13 = arith.constant 0 : index
    %c0_14 = arith.constant 0 : index
    %37 = vector.load %arg2[%c0_13, %c0_14] : memref<8x8xf32, #tpu.memory_space<vmem>>, vector<8x8xf32>
    %cst_15 = arith.constant dense<0.000000e+00> : vector<64x8xf32>
    %38 = tpu.matmul %31, %37, %cst_15 {dimension_numbers = #tpu.dot_dimension_numbers<[1], [0], [0], [1], [0, 0, 1, 1], [], []>} : vector<64x8xf32>, vector<8x8xf32>, vector<64x8xf32> -> vector<64x8xf32>
    %c0_16 = arith.constant 0 : index
    %c0_17 = arith.constant 0 : index
    %39 = vector.load %arg3[%c0_16, %c0_17] : memref<8x8xf32, #tpu.memory_space<vmem>>, vector<8x8xf32>
    %cst_18 = arith.constant dense<0.000000e+00> : vector<64x8xf32>
    %40 = tpu.matmul %36, %39, %cst_18 {dimension_numbers = #tpu.dot_dimension_numbers<[1], [0], [0], [1], [0, 0, 1, 1], [], []>} : vector<64x8xf32>, vector<8x8xf32>, vector<64x8xf32> -> vector<64x8xf32>
    %41 = arith.addf %38, %40 : vector<64x8xf32>
    %c0_19 = arith.constant 0 : index
    %c0_20 = arith.constant 0 : index
    %42 = vector.load %arg4[%c0_19, %c0_20] : memref<1x8xf32, #tpu.memory_space<vmem>>, vector<1x8xf32>
    %43 = vector.broadcast %42 : vector<1x8xf32> to vector<64x8xf32>
    %44 = arith.addf %41, %43 : vector<64x8xf32>
    %45 = vector.shape_cast %44 : vector<64x8xf32> to vector<8x8x8xf32>
    %c0_21 = arith.constant 0 : index
    %c0_22 = arith.constant 0 : index
    %c0_23 = arith.constant 0 : index
    %46 = vector.load %arg5[%c0_21, %c0_22, %c0_23] : memref<8x8x8xf32, #tpu.memory_space<vmem>>, vector<8x8x8xf32>
    tpu.vector_store %arg5[%c0_21, %c0_22, %c0_23], %45 {strides = array<i32>} : memref<8x8x8xf32, #tpu.memory_space<vmem>>, vector<8x8x8xf32>,
    return
  }
  func.func @transform_0(%arg0: i32) -> (i32, i32, i32, i32) {
    %c0_i32 = arith.constant 0 : i32
    %c0_i32_0 = arith.constant 0 : i32
    %c0_i32_1 = arith.constant 0 : i32
    %c0_i32_2 = arith.constant 0 : i32
    return %arg0, %c0_i32, %c0_i32_0, %c0_i32_1 : i32, i32, i32, i32
  }
  func.func @transform_1(%arg0: i32) -> (i32, i32) {
    %c0_i32 = arith.constant 0 : i32
    %c0_i32_0 = arith.constant 0 : i32
    %c0_i32_1 = arith.constant 0 : i32
    return %c0_i32, %c0_i32_0 : i32, i32
  }
  func.func @transform_2(%arg0: i32) -> (i32, i32) {
    %c0_i32 = arith.constant 0 : i32
    %c0_i32_0 = arith.constant 0 : i32
    %c0_i32_1 = arith.constant 0 : i32
    return %c0_i32, %c0_i32_0 : i32, i32
  }
  func.func @transform_3(%arg0: i32) -> (i32, i32) {
    %c0_i32 = arith.constant 0 : i32
    %c0_i32_0 = arith.constant 0 : i32
    %c0_i32_1 = arith.constant 0 : i32
    return %c0_i32, %c0_i32_0 : i32, i32
  }
  func.func @transform_4(%arg0: i32) -> (i32, i32, i32) {
    %c0_i32 = arith.constant 0 : i32
    %c0_i32_0 = arith.constant 0 : i32
    %c0_i32_1 = arith.constant 0 : i32
    return %arg0, %c0_i32, %c0_i32_0 : i32, i32, i32
  }
}

</mosaic_0001>

<bundles_post_ra>
// kernel: tpu_custom_call.1
= control target key start
LH: loop header
LB: loop body
LE: loop exit
PB: predicated region body
PF: predicated region fallthrough
CT: control target
= control target key end

     0   :  { %s918_s15 = smov 0   ;;  %s1152_s0 = inlined_call_operand.vmem [shape: f32[16,2,8,8], index: 0, kind: input, shape index: {}]   ;;  %s1153_s1 = inlined_call_operand.vmem [shape: f32[8,8], index: 1, kind: input, shape index: {}]   ;;  %s1154_s2 = inlined_call_operand.vmem [shape: f32[8,8], index: 2, kind: input, shape index: {}]   ;;  %s1155_s3 = inlined_call_operand.vmem [shape: f32[1,8], index: 3, kind: input, shape index: {}]   ;;  %s1156_s4 = inlined_call_operand.vmem [shape: f32[16,8,8], index: 4, kind: output, shape index: {}]  }
   0x1 LB: > { %s777_s16 = sadd.s32 4294967295, %s891_s15   ;;  %p781_p0 = scmp.ge.s32.totalorder %s891_s15, 1  ;;  %s891_s15 = sphi %s918_s15, %s14_s15  }
   0x2   : > { %p164_p1 = scmp.lt.s32.totalorder %s891_s15, 3 }
   0x4   : > { %p165_p2 = pnand %p781_p0, %p164_p1 }
   0x5   : > { %s782_s17 = sshll.u32 (!%p165_p2), %s777_s16, 3 }
   0x6   : > { %168 = sbr.rel (%p165_p2) target bundleno = 441 (0x1b9), region = 36  ;;  %p192_p3 = scmp.lt.s32.totalorder (!%p165_p2), %s782_s17, 15 }
   0xb   : > { %s1158_s17 = smov (!%p192_p3, %s782_s17), 15  ;;  %vm221_vm0 = vcmask 64512   ;;  %v439_v54 = vld [vmem:[%s1154_s2] sm:$0xff] }
   0xc   : > { %s814_s18 = sshll.u32 %s1158_s17, 4  ;;  %v438_v55 = vld [vmem:[%s1153_s1] sm:$0xff]  ;;  %833 = vmatprep.subr.mxu0 %v439_v54  ;;  %s786_s26 = sshll.u32 %s1158_s17, 3 }
   0xd   : > { %s932_s21 = scalar_lea.vmem %s1152_s0, %s814_s18  ;;  %847 = vmatprep.subr.mxu1 %v438_v55  ;;  %834 = vmatpush3.msra.mxu0 %v439_v54  ;;  %s1131_s5 = scalar_lea.vmem %s1156_s4, %s786_s26 }
   0xe   : > { %v935_v0 = vld [vmem:[%s932_s21 + $0x10] sm:$0xff]  ;;  %v938_v1 = vld [vmem:[%s932_s21] sm:$0xff]  ;;  %v941_v2 = vld [vmem:[%s932_s21 + $0x18] sm:$0xff]  ;;  %848 = vmatpush3.msra.mxu1 %v438_v55 }
   0xf   : > { %v225_v3 = vsel %vm221_vm0, %v935_v0, 0.0  ;;  %v222_v4 = vsel %vm221_vm0, %v938_v1, 0.0  ;;  %v948_v5 = vld [vmem:[%s932_s21 + $0x8] sm:$0xff]  ;;  %v249_v6 = vsel %vm221_vm0, %v941_v2, 0.0  ;;  %v278_v9 = vmul.f32 %v938_v1, %v938_v1  ;;  %v970_v17 = vld [vmem:[%s932_s21 + $0x20] sm:$0xff]  ;;  %v977_v20 = vld [vmem:[%s932_s21 + $0x38] sm:$0xff] }
  0x10   : > { %226 = vadd.xlane.f32.xlu1 %v225_v3  ;;  %223 = vadd.xlane.f32.xlu0 %v222_v4  ;;  %v246_v7 = vsel %vm221_vm0, %v948_v5, 0.0  ;;  %v310_v8 = vmul.f32 %v948_v5, %v948_v5  ;;  %v311_v12 = vmul.f32 %v941_v2, %v941_v2  ;;  %v279_v13 = vmul.f32 %v935_v0, %v935_v0  ;;  %v967_v16 = vld [vmem:[%s932_s21 + $0x28] sm:$0xff]  ;;  %v980_v21 = vld [vmem:[%s932_s21 + $0x30] sm:$0xff]  ;;  %v1002_v33 = vld [vmem:[%s932_s21 + $0x40] sm:$0xff] }
  0x11   : > { %v286_v11 = vsel %vm221_vm0, %v278_v9, 0.0  ;;  %v252_v18 = vsel %vm221_vm0, %v967_v16, 0.0  ;;  %v228_v19 = vsel %vm221_vm0, %v970_v17, 0.0  ;;  %v255_v22 = vsel %vm221_vm0, %v977_v20, 0.0  ;;  %v999_v32 = vld [vmem:[%s932_s21 + $0x48] sm:$0xff]  ;;  %v1009_v36 = vld [vmem:[%s932_s21 + $0x58] sm:$0xff] }
  0x12   : > { %v318_v10 = vsel %vm221_vm0, %v310_v8, 0.0  ;;  %v321_v14 = vsel %vm221_vm0, %v311_v12, 0.0  ;;  %v289_v15 = vsel %vm221_vm0, %v279_v13, 0.0  ;;  %v231_v23 = vsel %vm221_vm0, %v980_v21, 0.0  ;;  %v1012_v37 = vld [vmem:[%s932_s21 + $0x50] sm:$0xff]  ;;  %v1031_v48 = vld [vmem:[%s932_s21 + $0x68] sm:$0xff] }
  0x13   : > { %v312_v24 = vmul.f32 %v967_v16, %v967_v16  ;;  %v280_v25 = vmul.f32 %v970_v17, %v970_v17  ;;  %v313_v28 = vmul.f32 %v977_v20, %v977_v20  ;;  %v281_v29 = vmul.f32 %v980_v21, %v980_v21  ;;  %v1034_v49 = vld [vmem:[%s932_s21 + $0x60] sm:$0xff]  ;;  %v1041_v52 = vld [vmem:[%s932_s21 + $0x78] sm:$0xff]  ;;  %v1044_v53 = vld [vmem:[%s932_s21 + $0x70] sm:$0xff] }
  0x14   : > { %250 = vadd.xlane.f32.xlu1 %v249_v6  ;;  %247 = vadd.xlane.f32.xlu0 %v246_v7  ;;  %v258_v34 = vsel %vm221_vm0, %v999_v32, 0.0  ;;  %v234_v35 = vsel %vm221_vm0, %v1002_v33, 0.0  ;;  %v261_v38 = vsel %vm221_vm0, %v1009_v36, 0.0  ;;  %v237_v39 = vsel %vm221_vm0, %v1012_v37, 0.0 }
  0x15   : > { %v324_v26 = vsel %vm221_vm0, %v312_v24, 0.0  ;;  %v292_v27 = vsel %vm221_vm0, %v280_v25, 0.0  ;;  %v327_v30 = vsel %vm221_vm0, %v313_v28, 0.0  ;;  %v295_v31 = vsel %vm221_vm0, %v281_v29, 0.0 }
  0x16   : > { %v314_v40 = vmul.f32 %v999_v32, %v999_v32  ;;  %v282_v41 = vmul.f32 %v1002_v33, %v1002_v33  ;;  %v315_v44 = vmul.f32 %v1009_v36, %v1009_v36  ;;  %v283_v45 = vmul.f32 %v1012_v37, %v1012_v37 }
  0x17   : > { %v264_v50 = vsel %vm221_vm0, %v1031_v48, 0.0  ;;  %v240_v51 = vsel %vm221_vm0, %v1034_v49, 0.0  ;;  %v267_v56 = vsel %vm221_vm0, %v1041_v52, 0.0  ;;  %v243_v57 = vsel %vm221_vm0, %v1044_v53, 0.0 }
  0x18   : > { %319 = vadd.xlane.f32.xlu1 %v318_v10  ;;  %287 = vadd.xlane.f32.xlu0 %v286_v11  ;;  %v330_v42 = vsel %vm221_vm0, %v314_v40, 0.0  ;;  %v298_v43 = vsel %vm221_vm0, %v282_v41, 0.0  ;;  %v333_v46 = vsel %vm221_vm0, %v315_v44, 0.0  ;;  %v301_v47 = vsel %vm221_vm0, %v283_v45, 0.0 }
  0x19   : > { %v316_v58 = vmul.f32 %v1031_v48, %v1031_v48  ;;  %v284_v59 = vmul.f32 %v1034_v49, %v1034_v49  ;;  %v317_v62 = vmul.f32 %v1041_v52, %v1041_v52  ;;  %v285_v63 = vmul.f32 %v1044_v53, %v1044_v53 }
  0x1b   : > { %v336_v60 = vsel %vm221_vm0, %v316_v58, 0.0  ;;  %v304_v61 = vsel %vm221_vm0, %v284_v59, 0.0  ;;  %v339_v3 = vsel %vm221_vm0, %v317_v62, 0.0  ;;  %v307_v4 = vsel %vm221_vm0, %v285_v63, 0.0 }
  0x1c   : > { %322 = vadd.xlane.f32.xlu1 %v321_v14  ;;  %290 = vadd.xlane.f32.xlu0 %v289_v15 }
  0x20   : > { %253 = vadd.xlane.f32.xlu1 %v252_v18  ;;  %229 = vadd.xlane.f32.xlu0 %v228_v19 }
  0x24   : > { %256 = vadd.xlane.f32.xlu1 %v255_v22  ;;  %232 = vadd.xlane.f32.xlu0 %v231_v23 }
  0x28   : > { %325 = vadd.xlane.f32.xlu1 %v324_v26  ;;  %293 = vadd.xlane.f32.xlu0 %v292_v27 }
  0x2c   : > { %328 = vadd.xlane.f32.xlu1 %v327_v30  ;;  %296 = vadd.xlane.f32.xlu0 %v295_v31 }
  0x30   : > { %259 = vadd.xlane.f32.xlu1 %v258_v34  ;;  %235 = vadd.xlane.f32.xlu0 %v234_v35 }
  0x34   : > { %262 = vadd.xlane.f32.xlu1 %v261_v38  ;;  %238 = vadd.xlane.f32.xlu0 %v237_v39 }
  0x38   : > { %331 = vadd.xlane.f32.xlu1 %v330_v42  ;;  %299 = vadd.xlane.f32.xlu0 %v298_v43 }
  0x3c   : > { %334 = vadd.xlane.f32.xlu1 %v333_v46  ;;  %302 = vadd.xlane.f32.xlu0 %v301_v47 }
  0x40   : > { %265 = vadd.xlane.f32.xlu1 %v264_v50  ;;  %241 = vadd.xlane.f32.xlu0 %v240_v51 }
  0x44   : > { %268 = vadd.xlane.f32.xlu1 %v267_v56  ;;  %244 = vadd.xlane.f32.xlu0 %v243_v57 }
  0x48   : > { %337 = vadd.xlane.f32.xlu1 %v336_v60  ;;  %305 = vadd.xlane.f32.xlu0 %v304_v61 }
  0x4c   : > { %340 = vadd.xlane.f32.xlu1 %v339_v3  ;;  %308 = vadd.xlane.f32.xlu0 %v307_v4 }
  0x99   : > { %v227_v6 = vpop.xlane.xlu1 %226  ;;  %v224_v7 = vpop.xlane.xlu0 %223 }
  0x9d   : > { %v251_v8 = vpop.xlane.xlu1 %250  ;;  %v248_v9 = vpop.xlane.xlu0 %247 }
  0x9e   : > { %v270_v10 = vadd.f32 %v248_v9, %v224_v7  ;;  %v271_v11 = vadd.f32 %v251_v8, %v227_v6 }
  0xa0   : > { %v350_v12 = vmul.f32 0.0625, %v270_v10  ;;  %v351_v18 = vmul.f32 0.0625, %v271_v11 }
  0xa1   : > { %v320_v13 = vpop.xlane.xlu1 %319  ;;  %v288_v14 = vpop.xlane.xlu0 %287 }
  0xa2   : > { %v342_v15 = vadd.f32 %v320_v13, %v288_v14  ;;  %v366_v19 = vmul.f32 %v350_v12, %v350_v12  ;;  %v367_v28 = vmul.f32 %v351_v18, %v351_v18  ;;  %v422_v62 = vsub.f32 %v948_v5, %v350_v12 }
  0xa3   : > { %v406_v6 = vsub.f32 %v938_v1, %v350_v12 }
  0xa4   : > { %v358_v22 = vmul.f32 0.0625, %v342_v15  ;;  %v407_v15 = vsub.f32 %v935_v0, %v351_v18 }
  0xa5   : > { %v323_v23 = vpop.xlane.xlu1 %322  ;;  %v291_v24 = vpop.xlane.xlu0 %290 }
  0xa6   : > { %v374_v25 = vsub.f32 %v358_v22, %v366_v19  ;;  %v343_v26 = vadd.f32 %v323_v23, %v291_v24  ;;  %v423_v19 = vsub.f32 %v941_v2, %v351_v18 }
  0xa8   : > { %v382_v27 = vmax.f32 %v374_v25, 0.0  ;;  %v359_v29 = vmul.f32 0.0625, %v343_v26 }
  0xa9   : > { %v254_v30 = vpop.xlane.xlu1 %253  ;;  %v230_v31 = vpop.xlane.xlu0 %229 }
  0xaa   : > { %v390_v34 = vadd.f32 1e-05, %v382_v27  ;;  %v375_v35 = vsub.f32 %v359_v29, %v367_v28  ;;  %v272_v39 = vadd.f32 %v254_v30, %v230_v31 }
  0xac   : > { %869 = vrsqrt.f32 %v390_v34  ;;  %v383_v38 = vmax.f32 %v375_v35, 0.0  ;;  %v1068_v43 = vmul.f32 0.0625, %v272_v39 }
  0xad   : > { %v257_v40 = vpop.xlane.xlu1 %256  ;;  %v233_v41 = vpop.xlane.xlu0 %232 }
  0xae   : > { %v391_v42 = vadd.f32 1e-05, %v383_v38  ;;  %v273_v44 = vadd.f32 %v257_v40, %v233_v41  ;;  %v368_v51 = vmul.f32 %v1068_v43, %v1068_v43  ;;  %v424_v35 = vsub.f32 %v967_v16, %v1068_v43 }
  0xb0   : > { %871 = vrsqrt.f32 %v391_v42  ;;  %v1070_v50 = vmul.f32 0.0625, %v273_v44  ;;  %v408_v42 = vsub.f32 %v970_v17, %v1068_v43 }
  0xb1   : > { %v326_v45 = vpop.xlane.xlu1 %325  ;;  %v294_v46 = vpop.xlane.xlu0 %293 }
  0xb2   : > { %v344_v47 = vadd.f32 %v326_v45, %v294_v46  ;;  %v369_v60 = vmul.f32 %v1070_v50, %v1070_v50 }
  0xb4   : > { %v360_v54 = vmul.f32 0.0625, %v344_v47 }
  0xb5   : > { %v329_v55 = vpop.xlane.xlu1 %328  ;;  %v297_v56 = vpop.xlane.xlu0 %296 }
  0xb6   : > { %v376_v57 = vsub.f32 %v360_v54, %v368_v51  ;;  %v345_v58 = vadd.f32 %v329_v55, %v297_v56 }
  0xb8   : > { %v384_v59 = vmax.f32 %v376_v57, 0.0  ;;  %v361_v61 = vmul.f32 0.0625, %v345_v58  ;;  %v409_v57 = vsub.f32 %v980_v21, %v1070_v50  ;;  %v425_v58 = vsub.f32 %v977_v20, %v1070_v50 }
  0xb9   : > { %v870_v63 = vpop.eup %869  ;;  %v260_v3 = vpop.xlane.xlu1 %259 }
  0xba   : > { %v236_v4 = vpop.xlane.xlu0 %235  ;;  %v392_v7 = vadd.f32 1e-05, %v384_v59  ;;  %v377_v8 = vsub.f32 %v361_v61, %v369_v60  ;;  %v430_v9 = vmul.f32 %v870_v63, %v422_v62  ;;  %v414_v10 = vmul.f32 %v870_v63, %v406_v6 }
  0xbb   : > { %v274_v13 = vadd.f32 %v260_v3, %v236_v4 }
  0xbc   : > { %873 = vrsqrt.f32 %v392_v7  ;;  %v385_v11 = vmax.f32 %v377_v8, 0.0  ;;  %835 = vmatprep.mubr.msk.f32.mxu0 %vm221_vm0, %v430_v9  ;;  %849 = vmatprep.mubr.msk.f32.mxu1 %vm221_vm0, %v414_v10 }
  0xbd   : > { %v872_v14 = vpop.eup %871  ;;  %v263_v5 = vpop.xlane.xlu1 %262  ;;  %v1082_v24 = vmul.f32 0.0625, %v274_v13 }
  0xbe   : > { %v239_v22 = vpop.xlane.xlu0 %238  ;;  %v393_v23 = vadd.f32 1e-05, %v385_v11  ;;  %v431_v1 = vmul.f32 %v872_v14, %v423_v19  ;;  %v415_v12 = vmul.f32 %v872_v14, %v407_v15 }
  0xbf   : > { %v275_v25 = vadd.f32 %v263_v5, %v239_v22  ;;  %v370_v2 = vmul.f32 %v1082_v24, %v1082_v24  ;;  %v410_v11 = vsub.f32 %v1002_v33, %v1082_v24  ;;  %v426_v13 = vsub.f32 %v999_v32, %v1082_v24 }
  0xc0   : > { %875 = vrsqrt.f32 %v393_v23  ;;  %836 = vmatmul.mubr.msk.f32.vlgmr.msra.gmra.mxu0 %vm221_vm0, %v431_v1  ;;  %850 = vmatmul.mubr.msk.f32.vlgmr.msra.gmra.mxu1 %vm221_vm0, %v415_v12 }
  0xc1   : > { %v332_v26 = vpop.xlane.xlu1 %331  ;;  %v1086_v28 = vmul.f32 0.0625, %v275_v25 }
  0xc2   : > { %v300_v27 = vpop.xlane.xlu0 %299 }
  0xc3   : > { %v346_v0 = vadd.f32 %v332_v26, %v300_v27  ;;  %v371_v39 = vmul.f32 %v1086_v28, %v1086_v28  ;;  %v411_v25 = vsub.f32 %v1012_v37, %v1086_v28  ;;  %v427_v26 = vsub.f32 %v1009_v36, %v1086_v28 }
  0xc5   : > { %v362_v18 = vmul.f32 0.0625, %v346_v0  ;;  %v335_v29 = vpop.xlane.xlu1 %334 }
  0xc6   : > { %v303_v30 = vpop.xlane.xlu0 %302 }
  0xc7   : > { %v378_v31 = vsub.f32 %v362_v18, %v370_v2  ;;  %v347_v34 = vadd.f32 %v335_v29, %v303_v30 }
  0xc9   : > { %v386_v38 = vmax.f32 %v378_v31, 0.0  ;;  %v363_v40 = vmul.f32 0.0625, %v347_v34  ;;  %v874_v41 = vpop.eup %873  ;;  %v266_v44 = vpop.xlane.xlu1 %265 }
  0xca   : > { %v242_v45 = vpop.xlane.xlu0 %241  ;;  %v432_v51 = vmul.f32 %v874_v41, %v424_v35  ;;  %v416_v54 = vmul.f32 %v874_v41, %v408_v42 }
  0xcb   : > { %v394_v46 = vadd.f32 1e-05, %v386_v38  ;;  %v379_v47 = vsub.f32 %v363_v40, %v371_v39  ;;  %v276_v56 = vadd.f32 %v266_v44, %v242_v45 }
  0xcc   : > { %838 = vmatprep.mubr.msk.f32.mxu0 %vm221_vm0, %v432_v51  ;;  %852 = vmatprep.mubr.msk.f32.mxu1 %vm221_vm0, %v416_v54 }
  0xcd   : > { %877 = vrsqrt.f32 %v394_v46  ;;  %v387_v55 = vmax.f32 %v379_v47, 0.0  ;;  %v876_v16 = vpop.eup %875  ;;  %v269_v17 = vpop.xlane.xlu1 %268  ;;  %v356_v62 = vmul.f32 0.0625, %v276_v56 }
  0xce   : > { %v245_v43 = vpop.xlane.xlu0 %244  ;;  %v433_v60 = vmul.f32 %v876_v16, %v425_v58  ;;  %v417_v61 = vmul.f32 %v876_v16, %v409_v57 }
  0xcf   : > { %v395_v59 = vadd.f32 1e-05, %v387_v55  ;;  %v277_v63 = vadd.f32 %v269_v17, %v245_v43  ;;  %v372_v7 = vmul.f32 %v356_v62, %v356_v62  ;;  %v412_v37 = vsub.f32 %v1034_v49, %v356_v62 }
  0xd0   : > { %839 = vmatmul.mubr.msk.f32.gmra.mxu0 %vm221_vm0, %v433_v60  ;;  %853 = vmatmul.mubr.msk.f32.gmra.mxu1 %vm221_vm0, %v417_v61  ;;  %v428_v36 = vsub.f32 %v1031_v48, %v356_v62 }
  0xd1   : > { %879 = vrsqrt.f32 %v395_v59  ;;  %v338_v3 = vpop.xlane.xlu1 %337  ;;  %v357_v6 = vmul.f32 0.0625, %v277_v63 }
  0xd2   : > { %v306_v4 = vpop.xlane.xlu0 %305 }
  0xd3   : > { %v348_v21 = vadd.f32 %v338_v3, %v306_v4  ;;  %v373_v15 = vmul.f32 %v357_v6, %v357_v6  ;;  %v413_v29 = vsub.f32 %v1044_v53, %v357_v6  ;;  %v429_v30 = vsub.f32 %v1041_v52, %v357_v6  ;;  %v811_v53 = vld [vmem:[%s1155_s3] ss:$0 sm:$0xff] }
  0xd5   : > { %v364_v20 = vmul.f32 0.0625, %v348_v21  ;;  %v341_v50 = vpop.xlane.xlu1 %340 }
  0xd6   : > { %v309_v8 = vpop.xlane.xlu0 %308 }
  0xd7   : > { %v380_v9 = vsub.f32 %v364_v20, %v372_v7  ;;  %v349_v10 = vadd.f32 %v341_v50, %v309_v8 }
  0xd9   : > { %v388_v14 = vmax.f32 %v380_v9, 0.0  ;;  %v365_v19 = vmul.f32 0.0625, %v349_v10 }
  0xda   : > { %v878_v5 = vpop.eup %877 }
  0xdb   : > { %v396_v22 = vadd.f32 1e-05, %v388_v14  ;;  %v381_v23 = vsub.f32 %v365_v19, %v373_v15  ;;  %v434_v1 = vmul.f32 %v878_v5, %v426_v13  ;;  %v418_v12 = vmul.f32 %v878_v5, %v410_v11 }
  0xdd   : > { %881 = vrsqrt.f32 %v396_v22  ;;  %v389_v27 = vmax.f32 %v381_v23, 0.0  ;;  %841 = vmatprep.mubr.msk.f32.mxu0 %vm221_vm0, %v434_v1  ;;  %855 = vmatprep.mubr.msk.f32.mxu1 %vm221_vm0, %v418_v12 }
  0xde   : > { %v880_v32 = vpop.eup %879 }
  0xdf   : > { %v397_v33 = vadd.f32 1e-05, %v389_v27  ;;  %v435_v24 = vmul.f32 %v880_v32, %v427_v26  ;;  %v419_v0 = vmul.f32 %v880_v32, %v411_v25 }
  0xe1   : > { %883 = vrsqrt.f32 %v397_v33  ;;  %842 = vmatmul.mubr.msk.f32.gmra.mxu0 %vm221_vm0, %v435_v24  ;;  %856 = vmatmul.mubr.msk.f32.gmra.mxu1 %vm221_vm0, %v419_v0 }
  0xea   : > { %v882_v28 = vpop.eup %881 }
  0xeb   : > { %v436_v2 = vmul.f32 %v882_v28, %v428_v36  ;;  %v420_v18 = vmul.f32 %v882_v28, %v412_v37 }
  0xed   : > { %844 = vmatprep.mubr.msk.f32.mxu0 %vm221_vm0, %v436_v2  ;;  %858 = vmatprep.mubr.msk.f32.mxu1 %vm221_vm0, %v420_v18 }
  0xee   : > { %v884_v31 = vpop.eup %883 }
  0xef   : > { %v437_v34 = vmul.f32 %v884_v31, %v429_v30  ;;  %v421_v35 = vmul.f32 %v884_v31, %v413_v29 }
  0xf1   : > { %845 = vmatmul.mubr.msk.f32.gmra.mxu0 %vm221_vm0, %v437_v34  ;;  %859 = vmatmul.mubr.msk.f32.gmra.mxu1 %vm221_vm0, %v421_v35 }
 0x180   : > { %v837_v48 = vpop.f32.mrf.mxu0  ;;  %v851_v49 = vpop.f32.mrf.mxu1 }
 0x181   : > { %v665_v38 = vadd.f32 %v851_v49, %v837_v48 }
 0x182   : > { %v530_v52 = vpop.f32.mrf.mxu0  ;;  %v659_v39 = vpop.f32.mrf.mxu1 }
 0x183   : > { %v706_v40 = vadd.f32 %v811_v53, %v665_v38  ;;  %v660_v41 = vadd.f32 %v659_v39, %v530_v52 }
 0x185   : > { %714 = vst.msk [vmem:[%s1131_s5 + $0x8] sm:$0xff] %vm221_vm0, %v706_v40  ;;  %v705_v42 = vadd.f32 %v811_v53, %v660_v41 }
 0x187   : > { %713 = vst.msk [vmem:[%s1131_s5] sm:$0xff] %vm221_vm0, %v705_v42 }
 0x190   : > { %v840_v44 = vpop.f32.mrf.mxu0  ;;  %v854_v45 = vpop.f32.mrf.mxu1 }
 0x191   : > { %v675_v46 = vadd.f32 %v854_v45, %v840_v44 }
 0x192   : > { %v540_v47 = vpop.f32.mrf.mxu0  ;;  %v669_v51 = vpop.f32.mrf.mxu1 }
 0x193   : > { %v708_v54 = vadd.f32 %v811_v53, %v675_v46  ;;  %v670_v55 = vadd.f32 %v669_v51, %v540_v47 }
 0x195   : > { %716 = vst.msk [vmem:[%s1131_s5 + $0x18] sm:$0xff] %vm221_vm0, %v708_v54  ;;  %v707_v56 = vadd.f32 %v811_v53, %v670_v55 }
 0x197   : > { %715 = vst.msk [vmem:[%s1131_s5 + $0x10] sm:$0xff] %vm221_vm0, %v707_v56 }
 0x1a1   : > { %v843_v16 = vpop.f32.mrf.mxu0  ;;  %v857_v57 = vpop.f32.mrf.mxu1 }
 0x1a2   : > { %v685_v58 = vadd.f32 %v857_v57, %v843_v16 }
 0x1a3   : > { %v550_v17 = vpop.f32.mrf.mxu0  ;;  %v679_v43 = vpop.f32.mrf.mxu1 }
 0x1a4   : > { %v710_v59 = vadd.f32 %v811_v53, %v685_v58  ;;  %v680_v60 = vadd.f32 %v679_v43, %v550_v17 }
 0x1a6   : > { %718 = vst.msk [vmem:[%s1131_s5 + $0x28] sm:$0xff] %vm221_vm0, %v710_v59  ;;  %v709_v61 = vadd.f32 %v811_v53, %v680_v60 }
 0x1a8   : > { %717 = vst.msk [vmem:[%s1131_s5 + $0x20] sm:$0xff] %vm221_vm0, %v709_v61 }
 0x1b1   : > { %v846_v62 = vpop.f32.mrf.mxu0  ;;  %v860_v63 = vpop.f32.mrf.mxu1 }
 0x1b2   : > { %v695_v3 = vadd.f32 %v860_v63, %v846_v62 }
 0x1b3   : > { %v560_v4 = vpop.f32.mrf.mxu0  ;;  %v689_v21 = vpop.f32.mrf.mxu1 }
 0x1b4   : > { %v712_v6 = vadd.f32 %v811_v53, %v695_v3  ;;  %v690_v7 = vadd.f32 %v689_v21, %v560_v4 }
 0x1b6   : > { %720 = vst.msk [vmem:[%s1131_s5 + $0x38] sm:$0xff] %vm221_vm0, %v712_v6  ;;  %v711_v20 = vadd.f32 %v811_v53, %v690_v7 }
 0x1b8   : > { %719 = vst.msk [vmem:[%s1131_s5 + $0x30] sm:$0xff] %vm221_vm0, %v711_v20 }
 0x1b9 PF: > { %s14_s15 = sadd.s32 1, %s891_s15  }
 0x1ba   : > { %p11_p4 = scmp.ge.s32.totalorder %s14_s15, 4  }
 0x1bc   :  { %13 = sbr.rel (!%p11_p4) target bundleno = 1 (0x1), region = 67 }

</bundles_post_ra>
